<compile_context>
chip_gen: v7x
topology: tpu7x:2x2x1
jax: 0.10.0
libtpu: 0.0.40
codegen_flags: <defaults>
</compile_context>

<pallas_src>
import jax
import jax.numpy as jnp
import numpy as np
from jax import lax
from jax.experimental import pallas as pl
from jax.experimental.pallas import tpu as pltpu

_EPS = 1e-8
_SLAB = 128  # vocab sub-slab processed per inner step (one lane-width)


def _round_up(x, m):
    return ((x + m - 1) // m) * m


def _tre_kernel(tok_ref, emb_ref, rep_ref, out_ref, acc_ref):
    # tok_ref:  (Bt, L)   int32    leaf token ids; masked/padded leaves == -1
    # emb_ref:  (Vt, D)   bfloat16 vocab block (full table if resident)
    # rep_ref:  (Bt, D)   float32  target representations
    # out_ref:  (Bt, 128) float32  cosine distance broadcast across lanes
    # acc_ref:  (Bt, D)   float32  VMEM accumulator for composed reps
    vid = pl.program_id(1)

    @pl.when(vid == 0)
    def _init():
        acc_ref[...] = jnp.zeros_like(acc_ref)

    Bt, L = tok_ref.shape
    Vt, D = emb_ref.shape
    n_slabs = Vt // _SLAB

    # Shift tokens to be relative to this vocab block so the per-slab compare
    # uses a single loop-invariant iota (no per-step 64-vreg iota+base add).
    tok_rel = tok_ref[...] - vid * Vt                          # (Bt, L) int32
    iota = lax.broadcasted_iota(jnp.int32, (Bt, _SLAB), 1)     # loop-invariant

    def slab_body(c, acc):
        base = c * _SLAB
        t = tok_rel - base                                     # (Bt, L)
        # counts[b, j] = #valid leaves of example b hitting vocab id
        # (vid*Vt + base + j).  Built directly in bf16 (exact for counts
        # <= 256); masked leaves (-1) and out-of-slab tokens never match.
        counts = (iota == t[:, 0:1]).astype(jnp.bfloat16)
        for l in range(1, L):                                  # L static & small
            counts = counts + (iota == t[:, l:l + 1]).astype(jnp.bfloat16)
        e = emb_ref[pl.ds(pl.multiple_of(base, _SLAB), _SLAB), :]
        # compose(expr) with additive comp_fn == counts @ emb (bf16 MXU, f32 acc)
        return acc + jnp.dot(counts, e, preferred_element_type=jnp.float32)

    partial = lax.fori_loop(0, n_slabs, slab_body,
                            jnp.zeros((Bt, D), jnp.float32),
                            unroll=(n_slabs <= 8))
    acc_ref[...] += partial

    @pl.when(vid == pl.num_programs(1) - 1)
    def _finalize():
        composed = acc_ref[...]                                # (Bt, D)
        rep = rep_ref[...]                                     # (Bt, D) f32
        dot = jnp.sum(composed * rep, axis=-1, keepdims=True)  # (Bt, 1)
        ssc = jnp.sum(composed * composed, axis=-1, keepdims=True)
        ssr = jnp.sum(rep * rep, axis=-1, keepdims=True)
        dist = 1.0 - dot * lax.rsqrt(ssc + _EPS) * lax.rsqrt(ssr + _EPS)
        out_ref[...] = jnp.broadcast_to(dist, out_ref.shape)   # lane-dense


def prepare_embedding(emb, *, block_v=1024, resident_bytes=8 * 1024 * 1024):
    """One-time table prep (hoist out of the per-call path): bf16 cast +
    vocab padding.  D is intentionally NOT padded (keeps HBM/MXU traffic low)."""
    V, D = emb.shape
    Vp = _round_up(V, _SLAB)
    if Vp * D * 2 > resident_bytes:
        # Streaming path: pad vocab to a multiple of the stream block.
        Vp = _round_up(Vp, _round_up(block_v, _SLAB))
    return jnp.zeros((Vp, D), jnp.bfloat16).at[:V].set(emb.astype(jnp.bfloat16))


def tre_objective(tokens, mask, emb_p, rep, *, block_b=128, block_v=1024,
                  resident_bytes=8 * 1024 * 1024):
    """err(compose(expr), rep) for a batch of (padded) expressions.

    `emb_p` must come from `prepare_embedding` (bf16, vocab padded to 128)."""
    B, L = tokens.shape
    Vp, D = emb_p.shape
    assert Vp % _SLAB == 0, "emb must be prepared with prepare_embedding()"

    # ---- batch tiling: don't pad tiny batches to 128; aim for >=2 blocks so
    # the parallel axis can shard across both v7x TensorCores.
    Bp = _round_up(B, 8)
    Bt = min(block_b, Bp)
    if Bp >= 16 and Bp // Bt < 2:
        Bt = _round_up((Bp + 1) // 2, 8)
    Bp = _round_up(Bp, Bt)
    nb = Bp // Bt

    # ---- vocab tiling: keep the whole table resident in VMEM when it fits,
    # otherwise stream it in (Vt, D) blocks over the reduction grid axis.
    emb_bytes = Vp * D * 2
    if emb_bytes <= resident_bytes:
        Vt = Vp                                    # fetched once, reused by all
        emb_index = lambda b, v: (0, 0)
        emb_reads = 1
    else:
        Vt = min(_round_up(block_v, _SLAB), Vp)
        if Vp % Vt != 0:                           # robustness fallback only
            Vp2 = _round_up(Vp, Vt)
            emb_p = jnp.zeros((Vp2, D), emb_p.dtype).at[:Vp].set(emb_p)
            Vp = Vp2
        emb_index = lambda b, v: (v, 0)
        emb_reads = nb                             # re-streamed per batch block
    nv = Vp // Vt
    grid = (nb, nv)

    # ---- fold the mask into the token ids: padded leaves -> -1 never matches
    # any vocab slab, so no separate mask operand / select in the hot loop.
    tok_m = jnp.where(mask > 0, tokens.astype(jnp.int32), -1)
    tok_p = jnp.full((Bp, L), -1, jnp.int32).at[:B].set(tok_m)
    rep_p = jnp.zeros((Bp, D), jnp.float32).at[:B].set(rep.astype(jnp.float32))

    cost = pl.CostEstimate(
        flops=2 * Bp * Vp * D + 2 * Bp * L * Vp + 6 * Bp * D,
        transcendentals=2 * Bp,
        bytes_accessed=(tok_p.size * 4 + rep_p.size * 4 +
                        Vp * D * 2 * emb_reads + Bp * 128 * 4),
    )

    out = pl.pallas_call(
        _tre_kernel,
        out_shape=jax.ShapeDtypeStruct((Bp, 128), jnp.float32),
        grid_spec=pltpu.PrefetchScalarGridSpec(
            num_scalar_prefetch=0,
            grid=grid,
            in_specs=[
                pl.BlockSpec((Bt, L), lambda b, v: (b, 0)),    # tokens (masked)
                pl.BlockSpec((Vt, D), emb_index),              # emb table/block
                pl.BlockSpec((Bt, D), lambda b, v: (b, 0)),    # rep
            ],
            out_specs=pl.BlockSpec((Bt, 128), lambda b, v: (b, 0)),
            scratch_shapes=[pltpu.VMEM((Bt, D), jnp.float32)],
        ),
        compiler_params=pltpu.CompilerParams(
            dimension_semantics=("parallel", "arbitrary"),
            vmem_limit_bytes=32 * 1024 * 1024,
        ),
        cost_estimate=cost,
    )(tok_p, emb_p, rep_p)

    return out[:B, 0]


def _reference(tokens, mask, emb_bf16, rep):
    # Pure-JAX reference using the same bf16-quantized embedding table the
    # kernel consumes (both paths accumulate the composition in f32).
    emb_f32 = emb_bf16.astype(jnp.float32)
    leaf = emb_f32[tokens]                                        # (B, L, D)
    composed = jnp.sum(leaf * mask[:, :, None], axis=1)           # (B, D)
    dot = jnp.sum(composed * rep, axis=-1)
    nc = jnp.sqrt(jnp.sum(composed * composed, axis=-1) + _EPS)
    nr = jnp.sqrt(jnp.sum(rep * rep, axis=-1) + _EPS)
    return 1.0 - dot / (nc * nr)


if __name__ == "__main__":
    # Small deterministic setup: vocab=16, repr_size=32, batch=2, <=8 leaves.
    V, D = 16, 32
    B, L = 2, 8
    key = jax.random.PRNGKey(0)
    k_emb, k_tok, k_rep = jax.random.split(key, 3)

    # Embedding table (zero_init=False branch of the module __init__).
    emb = jax.random.normal(k_emb, (V, D), dtype=jnp.float32) * 0.1
    tokens = jax.random.randint(k_tok, (B, L), 0, V, dtype=jnp.int32)
    lengths = jnp.array([5, 8], dtype=jnp.int32)                  # leaves per expr
    mask = (jnp.arange(L)[None, :] < lengths[:, None]).astype(jnp.float32)
    rep = jax.random.normal(k_rep, (B, D), dtype=jnp.float32)

    emb_p = prepare_embedding(emb)            # one-time bf16 cast + vocab pad
    out = jax.block_until_ready(tre_objective(tokens, mask, emb_p, rep))

    ref = jax.block_until_ready(
        _reference(tokens, mask, emb.astype(jnp.bfloat16), rep))
    np.testing.assert_allclose(np.asarray(out), np.asarray(ref),
                               rtol=1e-4, atol=1e-4)
    print("KERNEL_OK")
</pallas_src>

<mosaic_0001>
module attributes {stable_mosaic.version = 11 : i64} {
  func.func @_tre_kernel(%arg0: i32, %arg1: i32, %arg2: memref<8x8xi32, #tpu.memory_space<vmem>>, %arg3: memref<128x32xbf16, #tpu.memory_space<vmem>>, %arg4: memref<8x32xf32, #tpu.memory_space<vmem>>, %arg5: memref<8x128xf32, #tpu.memory_space<vmem>>, %arg6: memref<8x32xf32, #tpu.memory_space<vmem>>) attributes {dimension_semantics = [#tpu.dimension_semantics<parallel>, #tpu.dimension_semantics<arbitrary>], iteration_bounds = array<i64: 1, 1>, scalar_prefetch = 0 : i64, scratch_operands = 1 : i64, tpu.core_type = #tpu.core_type<tc>, window_params = [{transform_indices = @transform_0, window_bounds = array<i64: 8, 8>}, {pipeline_mode = #tpu.pipeline_mode<synchronous>, transform_indices = @transform_1, window_bounds = array<i64: 128, 32>}, {transform_indices = @transform_2, window_bounds = array<i64: 8, 32>}, {transform_indices = @transform_3, window_bounds = array<i64: 8, 128>}]} {
    %c0_i32 = arith.constant 0 : i32
    %0 = arith.cmpi eq, %arg1, %c0_i32 : i32
    %1 = arith.extui %0 : i1 to i32
    %c0_i32_0 = arith.constant 0 : i32
    %2 = arith.cmpi ne, %1, %c0_i32_0 : i32
    scf.if %2 {
      %cst_12 = arith.constant 0.000000e+00 : f32
      %78 = vector.broadcast %cst_12 : f32 to vector<8x32xf32>
      %c0_13 = arith.constant 0 : index
      %c0_14 = arith.constant 0 : index
      %79 = vector.load %arg6[%c0_13, %c0_14] : memref<8x32xf32, #tpu.memory_space<vmem>>, vector<8x32xf32>
      tpu.vector_store %arg6[%c0_13, %c0_14], %78 {strides = array<i32>} : memref<8x32xf32, #tpu.memory_space<vmem>>, vector<8x32xf32>,
    } else {
    }
    %c0 = arith.constant 0 : index
    %c0_1 = arith.constant 0 : index
    %3 = vector.load %arg2[%c0, %c0_1] : memref<8x8xi32, #tpu.memory_space<vmem>>, vector<8x8xi32>
    %c128_i32 = arith.constant 128 : i32
    %4 = arith.muli %arg1, %c128_i32 : i32
    %5 = vector.broadcast %4 : i32 to vector<8x8xi32>
    %6 = arith.subi %3, %5 : vector<8x8xi32>
    %7 = tpu.iota {dimensions = array<i32: 1>} : vector<8x128xi32>
    %cst = arith.constant 0.000000e+00 : f32
    %8 = vector.broadcast %cst : f32 to vector<8x32xf32>
    %c0_i32_2 = arith.constant 0 : i32
    %c128_i32_3 = arith.constant 128 : i32
    %9 = arith.muli %c0_i32_2, %c128_i32_3 : i32
    %10 = vector.broadcast %9 : i32 to vector<8x8xi32>
    %11 = arith.subi %6, %10 : vector<8x8xi32>
    %12 = vector.extract_strided_slice %11 {offsets = [0, 0], sizes = [8, 1], strides = [1, 1]} : vector<8x8xi32> to vector<8x1xi32>
    %13 = vector.broadcast %12 : vector<8x1xi32> to vector<8x128xi32>
    %14 = arith.cmpi eq, %7, %13 : vector<8x128xi32>
    %15 = arith.extui %14 : vector<8x128xi1> to vector<8x128xi32>
    %16 = arith.sitofp %15 : vector<8x128xi32> to vector<8x128xf32>
    %17 = arith.truncf %16 : vector<8x128xf32> to vector<8x128xbf16>
    %18 = vector.extract_strided_slice %11 {offsets = [0, 1], sizes = [8, 1], strides = [1, 1]} : vector<8x8xi32> to vector<8x1xi32>
    %19 = vector.broadcast %18 : vector<8x1xi32> to vector<8x128xi32>
    %20 = arith.cmpi eq, %7, %19 : vector<8x128xi32>
    %21 = arith.extui %20 : vector<8x128xi1> to vector<8x128xi32>
    %22 = arith.sitofp %21 : vector<8x128xi32> to vector<8x128xf32>
    %23 = arith.truncf %22 : vector<8x128xf32> to vector<8x128xbf16>
    %24 = arith.addf %17, %23 : vector<8x128xbf16>
    %25 = vector.extract_strided_slice %11 {offsets = [0, 2], sizes = [8, 1], strides = [1, 1]} : vector<8x8xi32> to vector<8x1xi32>
    %26 = vector.broadcast %25 : vector<8x1xi32> to vector<8x128xi32>
    %27 = arith.cmpi eq, %7, %26 : vector<8x128xi32>
    %28 = arith.extui %27 : vector<8x128xi1> to vector<8x128xi32>
    %29 = arith.sitofp %28 : vector<8x128xi32> to vector<8x128xf32>
    %30 = arith.truncf %29 : vector<8x128xf32> to vector<8x128xbf16>
    %31 = arith.addf %24, %30 : vector<8x128xbf16>
    %32 = vector.extract_strided_slice %11 {offsets = [0, 3], sizes = [8, 1], strides = [1, 1]} : vector<8x8xi32> to vector<8x1xi32>
    %33 = vector.broadcast %32 : vector<8x1xi32> to vector<8x128xi32>
    %34 = arith.cmpi eq, %7, %33 : vector<8x128xi32>
    %35 = arith.extui %34 : vector<8x128xi1> to vector<8x128xi32>
    %36 = arith.sitofp %35 : vector<8x128xi32> to vector<8x128xf32>
    %37 = arith.truncf %36 : vector<8x128xf32> to vector<8x128xbf16>
    %38 = arith.addf %31, %37 : vector<8x128xbf16>
    %39 = vector.extract_strided_slice %11 {offsets = [0, 4], sizes = [8, 1], strides = [1, 1]} : vector<8x8xi32> to vector<8x1xi32>
    %40 = vector.broadcast %39 : vector<8x1xi32> to vector<8x128xi32>
    %41 = arith.cmpi eq, %7, %40 : vector<8x128xi32>
    %42 = arith.extui %41 : vector<8x128xi1> to vector<8x128xi32>
    %43 = arith.sitofp %42 : vector<8x128xi32> to vector<8x128xf32>
    %44 = arith.truncf %43 : vector<8x128xf32> to vector<8x128xbf16>
    %45 = arith.addf %38, %44 : vector<8x128xbf16>
    %46 = vector.extract_strided_slice %11 {offsets = [0, 5], sizes = [8, 1], strides = [1, 1]} : vector<8x8xi32> to vector<8x1xi32>
    %47 = vector.broadcast %46 : vector<8x1xi32> to vector<8x128xi32>
    %48 = arith.cmpi eq, %7, %47 : vector<8x128xi32>
    %49 = arith.extui %48 : vector<8x128xi1> to vector<8x128xi32>
    %50 = arith.sitofp %49 : vector<8x128xi32> to vector<8x128xf32>
    %51 = arith.truncf %50 : vector<8x128xf32> to vector<8x128xbf16>
    %52 = arith.addf %45, %51 : vector<8x128xbf16>
    %53 = vector.extract_strided_slice %11 {offsets = [0, 6], sizes = [8, 1], strides = [1, 1]} : vector<8x8xi32> to vector<8x1xi32>
    %54 = vector.broadcast %53 : vector<8x1xi32> to vector<8x128xi32>
    %55 = arith.cmpi eq, %7, %54 : vector<8x128xi32>
    %56 = arith.extui %55 : vector<8x128xi1> to vector<8x128xi32>
    %57 = arith.sitofp %56 : vector<8x128xi32> to vector<8x128xf32>
    %58 = arith.truncf %57 : vector<8x128xf32> to vector<8x128xbf16>
    %59 = arith.addf %52, %58 : vector<8x128xbf16>
    %60 = vector.extract_strided_slice %11 {offsets = [0, 7], sizes = [8, 1], strides = [1, 1]} : vector<8x8xi32> to vector<8x1xi32>
    %61 = vector.broadcast %60 : vector<8x1xi32> to vector<8x128xi32>
    %62 = arith.cmpi eq, %7, %61 : vector<8x128xi32>
    %63 = arith.extui %62 : vector<8x128xi1> to vector<8x128xi32>
    %64 = arith.sitofp %63 : vector<8x128xi32> to vector<8x128xf32>
    %65 = arith.truncf %64 : vector<8x128xf32> to vector<8x128xbf16>
    %66 = arith.addf %59, %65 : vector<8x128xbf16>
    %67 = tpu.assume_multiple %9, 128 : i32
    %68 = arith.index_cast %67 : i32 to index
    %c0_4 = arith.constant 0 : index
    %69 = vector.load %arg3[%68, %c0_4] : memref<128x32xbf16, #tpu.memory_space<vmem>>, vector<128x32xbf16>
    %cst_5 = arith.constant dense<0.000000e+00> : vector<8x32xf32>
    %70 = tpu.matmul %66, %69, %cst_5 {dimension_numbers = #tpu.dot_dimension_numbers<[1], [0], [0], [1], [0, 0, 1, 1], [], []>} : vector<8x128xbf16>, vector<128x32xbf16>, vector<8x32xf32> -> vector<8x32xf32>
    %71 = arith.addf %8, %70 : vector<8x32xf32>
    %c1_i32 = arith.constant 1 : i32
    %c0_6 = arith.constant 0 : index
    %c0_7 = arith.constant 0 : index
    %72 = vector.load %arg6[%c0_6, %c0_7] : memref<8x32xf32, #tpu.memory_space<vmem>>, vector<8x32xf32>
    %73 = arith.addf %72, %71 : vector<8x32xf32>
    %c0_8 = arith.constant 0 : index
    %c0_9 = arith.constant 0 : index
    %74 = vector.load %arg6[%c0_8, %c0_9] : memref<8x32xf32, #tpu.memory_space<vmem>>, vector<8x32xf32>
    tpu.vector_store %arg6[%c0_8, %c0_9], %73 {strides = array<i32>} : memref<8x32xf32, #tpu.memory_space<vmem>>, vector<8x32xf32>,
    %c0_i32_10 = arith.constant 0 : i32
    %75 = arith.cmpi eq, %arg1, %c0_i32_10 : i32
    %76 = arith.extui %75 : i1 to i32
    %c0_i32_11 = arith.constant 0 : i32
    %77 = arith.cmpi ne, %76, %c0_i32_11 : i32
    scf.if %77 {
      %c0_12 = arith.constant 0 : index
      %c0_13 = arith.constant 0 : index
      %78 = vector.load %arg6[%c0_12, %c0_13] : memref<8x32xf32, #tpu.memory_space<vmem>>, vector<8x32xf32>
      %c0_14 = arith.constant 0 : index
      %c0_15 = arith.constant 0 : index
      %79 = vector.load %arg4[%c0_14, %c0_15] : memref<8x32xf32, #tpu.memory_space<vmem>>, vector<8x32xf32>
      %80 = arith.mulf %78, %79 : vector<8x32xf32>
      %cst_16 = arith.constant dense<0.000000e+00> : vector<8xf32>
      %81 = vector.multi_reduction <add>, %80, %cst_16 [1] : vector<8x32xf32> to vector<8xf32>
      %82 = vector.shape_cast %81 : vector<8xf32> to vector<8x1xf32>
      %83 = arith.mulf %78, %78 : vector<8x32xf32>
      %cst_17 = arith.constant dense<0.000000e+00> : vector<8xf32>
      %84 = vector.multi_reduction <add>, %83, %cst_17 [1] : vector<8x32xf32> to vector<8xf32>
      %85 = vector.shape_cast %84 : vector<8xf32> to vector<8x1xf32>
      %86 = arith.mulf %79, %79 : vector<8x32xf32>
      %cst_18 = arith.constant dense<0.000000e+00> : vector<8xf32>
      %87 = vector.multi_reduction <add>, %86, %cst_18 [1] : vector<8x32xf32> to vector<8xf32>
      %88 = vector.shape_cast %87 : vector<8xf32> to vector<8x1xf32>
      %cst_19 = arith.constant 9.99999993E-9 : f32
      %89 = vector.broadcast %cst_19 : f32 to vector<8x1xf32>
      %90 = arith.addf %85, %89 : vector<8x1xf32>
      %91 = math.rsqrt %90 : vector<8x1xf32>
      %92 = arith.mulf %82, %91 : vector<8x1xf32>
      %cst_20 = arith.constant 9.99999993E-9 : f32
      %93 = vector.broadcast %cst_20 : f32 to vector<8x1xf32>
      %94 = arith.addf %88, %93 : vector<8x1xf32>
      %95 = math.rsqrt %94 : vector<8x1xf32>
      %96 = arith.mulf %92, %95 : vector<8x1xf32>
      %cst_21 = arith.constant 1.000000e+00 : f32
      %97 = vector.broadcast %cst_21 : f32 to vector<8x1xf32>
      %98 = arith.subf %97, %96 : vector<8x1xf32>
      %99 = vector.shape_cast %98 : vector<8x1xf32> to vector<8x1xf32>
      %100 = vector.broadcast %99 : vector<8x1xf32> to vector<8x128xf32>
      %c0_22 = arith.constant 0 : index
      %c0_23 = arith.constant 0 : index
      %101 = vector.load %arg5[%c0_22, %c0_23] : memref<8x128xf32, #tpu.memory_space<vmem>>, vector<8x128xf32>
      tpu.vector_store %arg5[%c0_22, %c0_23], %100 {strides = array<i32>} : memref<8x128xf32, #tpu.memory_space<vmem>>, vector<8x128xf32>,
    } else {
    }
    return
  }
  func.func @transform_0(%arg0: i32, %arg1: i32) -> (i32, i32) {
    %c0_i32 = arith.constant 0 : i32
    %c0_i32_0 = arith.constant 0 : i32
    return %arg0, %c0_i32 : i32, i32
  }
  func.func @transform_1(%arg0: i32, %arg1: i32) -> (i32, i32) {
    %c0_i32 = arith.constant 0 : i32
    %c0_i32_0 = arith.constant 0 : i32
    %c0_i32_1 = arith.constant 0 : i32
    return %c0_i32, %c0_i32_0 : i32, i32
  }
  func.func @transform_2(%arg0: i32, %arg1: i32) -> (i32, i32) {
    %c0_i32 = arith.constant 0 : i32
    %c0_i32_0 = arith.constant 0 : i32
    return %arg0, %c0_i32 : i32, i32
  }
  func.func @transform_3(%arg0: i32, %arg1: i32) -> (i32, i32) {
    %c0_i32 = arith.constant 0 : i32
    %c0_i32_0 = arith.constant 0 : i32
    return %arg0, %c0_i32 : i32, i32
  }
}

</mosaic_0001>

<bundles_post_ra>
// kernel: tpu_custom_call.1
= control target key start
LH: loop header
LB: loop body
LE: loop exit
PB: predicated region body
PF: predicated region fallthrough
CT: control target
= control target key end

     0   :  { %v339_v2 = vmov 2   ;;  %v340_v3 = vmov 0   ;;  %v341_v4 = vmov 0.0   ;;  %v342_v6 = vmov 3   ;;  %s435_s0 = inlined_call_operand.vmem [shape: s32[8,8], index: 0, kind: input, shape index: {}]   ;;  %s436_s1 = inlined_call_operand.vmem [shape: bf16[128,32], index: 1, kind: input, shape index: {}]   ;;  %s437_s2 = inlined_call_operand.vmem [shape: f32[8,32], index: 2, kind: input, shape index: {}]   ;;  %s438_s3 = inlined_call_operand.hbm [shape: f32[8,128], index: 3, kind: output, shape index: {}]  }
   0x1   :  { %v22_v0 = vld [vmem:[%s435_s0] sm:$0xff]  ;;  %296 = vset.pattern.permute.xlu1 %v339_v2  ;;  %294 = vset.pattern.permute.xlu0 %v340_v3  ;;  %v304_v5 = vld [vmem:[%s436_s1 + $0x8] sm:$0xff]   ;;  %v343_v7 = vmov 1  }
   0x2   :  { %v303_v1 = vld [vmem:[%s436_s1] sm:$0xff]   ;;  %44 = vperm.xlu1 %296, %v22_v0   ;;  %29 = vperm.xlu0 %294, %v22_v0  }
   0x3   :  { %263 = vmatprep.subr.bf16.mxu0 %v341_v4 }
   0x4   :  { %264 = vmatpush3.bf16.msra.mxu0 %v303_v1 }
   0x5   :  { %265 = vmatprep.subr.bf16.mxu0 %v341_v4 }
   0x6   :  { %297 = vset.pattern.permute.xlu1 %v342_v6  ;;  %295 = vset.pattern.permute.xlu0 %v343_v7 }
   0x7   :  { %52 = vperm.xlu1 %297, %v22_v0   ;;  %36 = vperm.xlu0 %295, %v22_v0  }
   0x8   :  { %266 = vmatpush3.bf16.msra.mxu0 %v304_v5 }
   0x9   :  { %8 = vsyncpa [#allocation4], 0  ;;  %267 = vmatprep.subr.bf16.mxu0 %v341_v4  ;;  %v305_v8 = vld [vmem:[%s436_s1 + $0x10] sm:$0xff]   ;;  %v344_v9 = vmov 4   ;;  %v345_v10 = vmov 5   ;;  %v306_v11 = vld [vmem:[%s436_s1 + $0x18] sm:$0xff]   ;;  %v26_v18 = vlaneseq }
   0xa   :  { %v346_v12 = vmov 6   ;;  %v347_v13 = vmov 7   ;;  %v307_v14 = vld [vmem:[%s436_s1 + $0x20] sm:$0xff]   ;;  %v308_v15 = vld [vmem:[%s436_s1 + $0x28] sm:$0xff]   ;;  %v309_v16 = vld [vmem:[%s436_s1 + $0x30] sm:$0xff]   ;;  %vm348_vm0 = vmmov 0  }
   0xb   :  { %298 = vset.pattern.permute.xlu1 %v344_v9  ;;  %299 = vset.pattern.permute.xlu0 %v345_v10  ;;  %vm20_vm1 = vcmask 261120   ;;  %v310_v17 = vld [vmem:[%s436_s1 + $0x38] sm:$0xff]   ;;  %v27_v19 = vand.u32 127, %v26_v18  ;;  %v203_v51 = vld [vmem:[%s437_s2] sm:$0xff]  ;;  %s349_s2 = smov [#allocation3]  }
   0xc   :  { %60 = vperm.xlu1 %298, %v22_v0   ;;  %68 = vperm.xlu0 %299, %v22_v0   ;;  %21 = vst.msk [vmem:[#allocation2] sm:$0xff] %vm20_vm1, %v341_v4  ;;  %v212_v52 = vmul.f32 %v203_v51, %v203_v51  ;;  %s230_s30 = sshll.u32 %s349_s2, 4  ;;  %s231_s30 = int_to_ptr.vmem [resolvable:$true] %s230_s30 }
   0xd   :  { %268 = vmatpush3.bf16.msra.mxu0 %v305_v8  ;;  %279 = vmatprep.mubr.msk.bf16.mxu0 %vm348_vm0, %v341_v4  ;;  %s315_s4 = scalar_lea.vmem %s231_s30, 128  ;;  %p320_p1 = scmp.lt.s32.totalorder %s231_s30, %s231_s30 }
   0xe   :  { %269 = vmatprep.subr.bf16.mxu0 %v341_v4  ;;  %v213_v53 = vsel %vm20_vm1, %v212_v52, 0.0  ;;  %p316_p0 = scmp.ne.s32.totalorder %s231_s30, %s315_s4  ;;  %p321_p2 = scmp.lt.s32.totalorder %s315_s4, %s315_s4 }
  0x10   :  { %300 = vset.pattern.permute.xlu1 %v346_v12  ;;  %302 = vset.pattern.permute.xlu0 %v347_v13  ;;  %p322_p3 = por %p321_p2, %p320_p1 }
  0x11   :  { %76 = vperm.xlu1 %300, %v22_v0   ;;  %270 = vmatpush3.bf16.msra.mxu0 %v306_v11 }
  0x12   :  { %271 = vmatprep.subr.bf16.mxu0 %v341_v4  ;;  %p323_p4 = pnand %p322_p3, %p316_p0 }
  0x13   :  { %v195_v54 = vld [vmem:[#allocation2] sm:$0xff] }
  0x15   :  { %301 = vset.pattern.permute.xlu1 %v347_v13  ;;  %272 = vmatpush3.bf16.msra.mxu0 %v307_v14 }
  0x16   :  { %84 = vperm.xlu1 %301, %v22_v0   ;;  %273 = vmatprep.subr.bf16.mxu0 %v341_v4 }
  0x19   :  { %274 = vmatpush3.bf16.msra.mxu0 %v308_v15 }
  0x1a   :  { %275 = vmatprep.subr.bf16.mxu0 %v341_v4 }
  0x1d   :  { %276 = vmatpush3.bf16.msra.mxu0 %v309_v16 }
  0x1e   :  { %277 = vmatprep.subr.bf16.mxu0 %v341_v4 }
  0x21   :  { %278 = vmatpush3.bf16.msra.mxu0 %v310_v17 }
  0x3a   :  { %214 = vadd.xlane.f32.xlu1 %v213_v53 }
  0x81   :  { %v45_v20 = vpop.permute.xlu1 %44  ;;  %v30_v21 = vpop.permute.xlu0 %29 }
  0x82   :  { %vm31_vm2 = vcmp.eq.s32.totalorder %v27_v19, %v30_v21  ;;  %vm46_vm3 = vcmp.eq.s32.totalorder %v27_v19, %v45_v20 }
  0x83   :  { %v238_v22 = vsel %vm31_vm2, 1.0, %v341_v4  ;;  %v240_v25 = vsel %vm46_vm3, 1.0, %v341_v4 }
  0x84   :  { %v34_v27 = vpack.c.bf16 %v238_v22, %v238_v22  ;;  %v49_v30 = vpack.c.bf16 %v240_v25, %v240_v25 }
  0x86   :  { %v53_v23 = vpop.permute.xlu1 %52  ;;  %v37_v24 = vpop.permute.xlu0 %36 }
  0x87   :  { %vm54_vm4 = vcmp.eq.s32.totalorder %v27_v19, %v53_v23  ;;  %vm38_vm5 = vcmp.eq.s32.totalorder %v27_v19, %v37_v24 }
  0x88   :  { %v239_v26 = vsel %vm38_vm5, 1.0, %v341_v4  ;;  %v241_v29 = vsel %vm54_vm4, 1.0, %v341_v4 }
  0x89   :  { %v41_v28 = vpack.c.bf16 %v239_v26, %v239_v26  ;;  %v57_v34 = vpack.c.bf16 %v241_v29, %v241_v29 }
  0x8b   :  { %v42_v31 = vadd.bf16 %v41_v28, %v34_v27  ;;  %v61_v32 = vpop.permute.xlu1 %60  ;;  %v69_v33 = vpop.permute.xlu0 %68 }
  0x8c   :  { %vm62_vm6 = vcmp.eq.s32.totalorder %v27_v19, %v61_v32  ;;  %vm70_vm7 = vcmp.eq.s32.totalorder %v27_v19, %v69_v33 }
  0x8d   :  { %v50_v35 = vadd.bf16 %v49_v30, %v42_v31  ;;  %v242_v36 = vsel %vm62_vm6, 1.0, %v341_v4  ;;  %v243_v37 = vsel %vm70_vm7, 1.0, %v341_v4 }
  0x8e   :  { %v65_v38 = vpack.c.bf16 %v242_v36, %v242_v36  ;;  %v73_v40 = vpack.c.bf16 %v243_v37, %v243_v37 }
  0x8f   :  { %v58_v39 = vadd.bf16 %v57_v34, %v50_v35 }
  0x90   :  { %v77_v41 = vpop.permute.xlu1 %76 }
  0x91   :  { %v66_v42 = vadd.bf16 %v65_v38, %v58_v39  ;;  %vm78_vm8 = vcmp.eq.s32.totalorder %v27_v19, %v77_v41 }
  0x92   :  { %v244_v43 = vsel %vm78_vm8, 1.0, %v341_v4 }
  0x93   :  { %v74_v44 = vadd.bf16 %v73_v40, %v66_v42  ;;  %v81_v45 = vpack.c.bf16 %v244_v43, %v244_v43 }
  0x95   :  { %v85_v46 = vpop.permute.xlu1 %84  ;;  %v82_v48 = vadd.bf16 %v81_v45, %v74_v44 }
  0x96   :  { %vm86_vm9 = vcmp.eq.s32.totalorder %v27_v19, %v85_v46 }
  0x97   :  { %v245_v47 = vsel %vm86_vm9, 1.0, %v341_v4 }
  0x98   :  { %v89_v49 = vpack.c.bf16 %v245_v47, %v245_v47 }
  0x9a   :  { %v90_v50 = vadd.bf16 %v89_v49, %v82_v48 }
  0x9c   :  { %280 = vmatmul.mubr.bf16.vlgmr.msra.gmra.mrb[0].mxu0 %v90_v50 }
  0xc7   :  { %v215_v1 = vpop.xlane.xlu1 %214 }
  0xc8   :  { %v219_v2 = vadd.f32 1e-08, %v215_v1 }
  0xca   :  { %311 = vrsqrt.f32 %v219_v2 }
  0xd4   :  { %v312_v5 = vpop.eup %311 }
 0x16f   :  { %v189_v55 = vpop.f32.mrb[0].mxu0 }
 0x170   :  { %v196_v56 = vadd.f32 %v195_v54, %v189_v55  ;;  %v281_v57 = vpop.f32.mrb[1].mxu0 }
 0x171   :  { %v192_v58 = vpop.f32.mrb[2].mxu0 }
 0x172   :  { %198 = vst.msk [vmem:[#allocation2] sm:$0xff] %vm20_vm1, %v196_v56  ;;  %v282_v59 = vpop.f32.mrb[3].mxu0 }
 0x179   :  { %v202_v60 = vld [vmem:[#allocation2] sm:$0xff] }
 0x17a   :  { %v208_v61 = vmul.f32 %v202_v60, %v202_v60  ;;  %v204_v63 = vmul.f32 %v203_v51, %v202_v60 }
 0x17c   :  { %v209_v62 = vsel %vm20_vm1, %v208_v61, 0.0  ;;  %v205_v0 = vsel %vm20_vm1, %v204_v63, 0.0 }
 0x17d   :  { %210 = vadd.xlane.f32.xlu0 %v209_v62 }
 0x181   :  { %206 = vadd.xlane.f32.xlu0 %v205_v0 }
 0x20a   :  { %v211_v3 = vpop.xlane.xlu0 %210 }
 0x20b   :  { %v216_v4 = vadd.f32 1e-08, %v211_v3 }
 0x20d   :  { %313 = vrsqrt.f32 %v216_v4 }
 0x20e   :  { %v207_v7 = vpop.xlane.xlu0 %206 }
 0x217   :  { %v314_v6 = vpop.eup %313 }
 0x218   :  { %v218_v8 = vmul.f32 %v314_v6, %v207_v7 }
 0x21a   :  { %v221_v9 = vmul.f32 %v312_v5, %v218_v8 }
 0x21c   :  { %v222_v10 = vsub.f32 1.0, %v221_v9 }
 0x21e   :  { %223 = vst [vmem:[#allocation3] sm:$0xff] %v222_v10 }
 0x21f   :  { %326 = shalt.err (!%p323_p4)
}
 0x220   :  { %s327_s7 = scalar_lea.hbm %s438_s3, 128 }
 0x221   :  { %p328_p5 = scmp.ne.s32.totalorder %s438_s3, %s327_s7  ;;  %p331_p6 = scmp.lt.u32.totalorder %s327_s7, %s438_s3 }
 0x223   :  { %p333_p7 = pnand %p331_p6, %p328_p5 }
 0x225   :  { %336 = shalt.err (!%p333_p7)
}
 0x226   :  { %233 = dma.vmem_to_hbm [thread:$0]  %s231_s30, 128, %s438_s3, [#allocation4]  }
 0x227   :  { %337 = dma.done.wait [#allocation4], 128  }
 0x228   :  { %338 = vsyncadd [#allocation4], 4294967168 }
 0x229   :  { %237 = vsyncpa [#allocation4], 1 }

</bundles_post_ra>
